<compile_context>
chip_gen: v7x
topology: tpu7x:2x2x1
jax: 0.10.0
libtpu: 0.0.40
codegen_flags: <defaults>
</compile_context>

<pallas_src>
import math
from functools import partial

import jax
import jax.numpy as jnp
from jax.experimental import pallas as pl
from jax.experimental.pallas import tpu as pltpu


# ----------------------------- helpers -------------------------------------

def _round_up(x, m):
    return (x + m - 1) // m * m


def _pad_to(x, shape):
    pads = [(0, t - s) for s, t in zip(x.shape, shape)]
    if any(p[1] for p in pads):
        x = jnp.pad(x, pads)
    return x


def _heads_per_block(num_heads, head_dim):
    """Smallest head-group so the lane width (hpb*head_dim) is 128-dense."""
    for hpb in range(1, num_heads + 1):
        if num_heads % hpb == 0 and (hpb * head_dim) % 128 == 0:
            return hpb
    return num_heads  # block == full last dim; always a legal block shape


# --------------------------- tiled linear kernel ----------------------------

def _linear_kernel(x_ref, w_ref, b_ref, o_ref, acc_ref):
    k = pl.program_id(2)

    @pl.when(k == 0)
    def _init():
        acc_ref[...] = jnp.zeros(acc_ref.shape, acc_ref.dtype)

    acc_ref[...] += jnp.dot(
        x_ref[...], w_ref[...], preferred_element_type=jnp.float32
    )

    @pl.when(k == pl.num_programs(2) - 1)
    def _finalize():
        o_ref[...] = (acc_ref[...] + b_ref[...]).astype(o_ref.dtype)


def linear(x, w, b, *, out_dtype=None, mxu_dtype=jnp.bfloat16,
           tm=256, tn=512, tk=512):
    """y = x @ w + b, tiled Pallas matmul with f32 accumulation.

    x: (M, K), w: (K, N), b: (N,).  Inputs are cast to `mxu_dtype` for the
    MXU; bias add is in f32; output is cast to `out_dtype` (defaults to
    x.dtype).  Ragged dims are zero-padded up to the tile size.
    """
    M, K = x.shape
    K2, N = w.shape
    assert K == K2 and b.shape == (N,)
    out_dtype = x.dtype if out_dtype is None else out_dtype
    cdtype = mxu_dtype if mxu_dtype is not None else x.dtype

    bm = M if M <= tm else tm
    bn = N if N <= tn else tn
    bk = K if K <= tk else tk
    Mp, Np, Kp = _round_up(M, bm), _round_up(N, bn), _round_up(K, bk)

    xp = _pad_to(x.astype(cdtype), (Mp, Kp))
    wp = _pad_to(w.astype(cdtype), (Kp, Np))
    bp = _pad_to(b.astype(jnp.float32).reshape(1, N), (1, Np))

    grid = (Mp // bm, Np // bn, Kp // bk)
    itemsize = jnp.dtype(cdtype).itemsize
    cost = pl.CostEstimate(
        flops=2 * M * N * K,
        transcendentals=0,
        bytes_accessed=(Mp * Kp + Kp * Np) * itemsize
        + Mp * Np * jnp.dtype(out_dtype).itemsize,
    )

    out = pl.pallas_call(
        _linear_kernel,
        out_shape=jax.ShapeDtypeStruct((Mp, Np), out_dtype),
        grid_spec=pltpu.PrefetchScalarGridSpec(
            num_scalar_prefetch=0,
            grid=grid,
            in_specs=[
                pl.BlockSpec((bm, bk), lambda i, j, k: (i, k)),
                pl.BlockSpec((bk, bn), lambda i, j, k: (k, j)),
                pl.BlockSpec((1, bn), lambda i, j, k: (0, j)),
            ],
            out_specs=pl.BlockSpec((bm, bn), lambda i, j, k: (i, j)),
            scratch_shapes=[pltpu.VMEM((bm, bn), jnp.float32)],
        ),
        compiler_params=pltpu.CompilerParams(
            dimension_semantics=("parallel", "parallel", "arbitrary"),
            vmem_limit_bytes=32 * 1024 * 1024,
        ),
        cost_estimate=cost,
    )(xp, wp, bp)
    return out[:M, :N]


# ------------------------ flash attention kernel ----------------------------

def _flash_attention_kernel(q_ref, k_ref, v_ref, o_ref,
                            m_scr, l_scr, acc_scr, *, hpb, head_dim):
    # q_ref: (tq, hpb*D)   (softmax scale already folded into q projection)
    # k_ref, v_ref: (tk, hpb*D)
    ki = pl.program_id(3)

    @pl.when(ki == 0)
    def _init():
        m_scr[...] = jnp.full(m_scr.shape, -jnp.inf, dtype=m_scr.dtype)
        l_scr[...] = jnp.zeros(l_scr.shape, l_scr.dtype)
        acc_scr[...] = jnp.zeros(acc_scr.shape, acc_scr.dtype)

    q = q_ref[...]
    k = k_ref[...]
    v = v_ref[...]

    # Static unroll over the heads packed along the lane axis of this block.
    for h in range(hpb):
        sl = slice(h * head_dim, (h + 1) * head_dim)
        qh, kh, vh = q[:, sl], k[:, sl], v[:, sl]

        # scores = qh @ kh^T without materializing the transpose.
        s = jax.lax.dot_general(
            qh, kh, (((1,), (1,)), ((), ())),
            preferred_element_type=jnp.float32)              # (tq, tk) f32

        m_prev = m_scr[h]                                    # (tq, 1)
        m_new = jnp.maximum(m_prev, jnp.max(s, axis=-1, keepdims=True))
        alpha = jnp.exp(m_prev - m_new)
        p = jnp.exp(s - m_new)                               # (tq, tk) f32

        l_scr[h] = alpha * l_scr[h] + jnp.sum(p, axis=-1, keepdims=True)
        acc_scr[h] = alpha * acc_scr[h] + jnp.dot(
            p.astype(vh.dtype), vh, preferred_element_type=jnp.float32)
        m_scr[h] = m_new

    @pl.when(ki == pl.num_programs(3) - 1)
    def _finalize():
        parts = [acc_scr[h] * pl.reciprocal(l_scr[h], approx=True)
                 for h in range(hpb)]
        out = parts[0] if hpb == 1 else jnp.concatenate(parts, axis=-1)
        o_ref[...] = out.astype(o_ref.dtype)


def attention_core(q, k, v, *, num_heads, head_dim, tq=128, tk=128):
    """q, k, v: (B, S, H*D) with heads packed on the lane axis -> (B, S, H*D)."""
    B, S, HD = q.shape
    assert HD == num_heads * head_dim
    hpb = _heads_per_block(num_heads, head_dim)
    bh = hpb * head_dim

    btq = S if S <= tq else tq
    btk = S if S <= tk else tk
    # TODO(synk): pad ragged sequence lengths instead of asserting divisibility.
    assert S % btq == 0 and S % btk == 0

    grid = (B, num_heads // hpb, S // btq, S // btk)

    q_spec = pl.BlockSpec((None, btq, bh), lambda b, h, qi, ki: (b, qi, h))
    kv_spec = pl.BlockSpec((None, btk, bh), lambda b, h, qi, ki: (b, ki, h))
    o_spec = pl.BlockSpec((None, btq, bh), lambda b, h, qi, ki: (b, qi, h))

    itemsize = q.dtype.itemsize
    cost = pl.CostEstimate(
        flops=4 * B * num_heads * S * S * head_dim,
        transcendentals=B * num_heads * S * S,
        bytes_accessed=4 * B * S * HD * itemsize,
    )

    return pl.pallas_call(
        partial(_flash_attention_kernel, hpb=hpb, head_dim=head_dim),
        out_shape=jax.ShapeDtypeStruct((B, S, HD), q.dtype),
        grid_spec=pltpu.PrefetchScalarGridSpec(
            num_scalar_prefetch=0,
            grid=grid,
            in_specs=[q_spec, kv_spec, kv_spec],
            out_specs=o_spec,
            scratch_shapes=[
                pltpu.VMEM((hpb, btq, 1), jnp.float32),        # running max
                pltpu.VMEM((hpb, btq, 1), jnp.float32),        # running sum
                pltpu.VMEM((hpb, btq, head_dim), jnp.float32),  # accumulator
            ],
        ),
        compiler_params=pltpu.CompilerParams(
            dimension_semantics=("parallel", "parallel", "parallel",
                                 "arbitrary"),
            vmem_limit_bytes=32 * 1024 * 1024,
        ),
        cost_estimate=cost,
    )(q, k, v)


# ------------------------------ Module glue --------------------------------

def init_params(
    key,
    *,
    hidden_size,
    num_heads,
    kv_compression_dim,
    head_dim,
    initializer_range,
    m_width,
    num_layers,
    init_method_mup=False,
):
    std = initializer_range
    if init_method_mup:
        std /= math.sqrt(m_width)
    keys = jax.random.split(key, 5)

    def w(k, shape, s):
        return s * jax.random.normal(k, shape, dtype=jnp.float32)

    params = {
        "q_proj_w": w(keys[0], (hidden_size, num_heads * head_dim), std),
        "q_proj_b": jnp.zeros((num_heads * head_dim,), jnp.float32),
        "kv_down_w": w(keys[1], (hidden_size, kv_compression_dim), std),
        "kv_down_b": jnp.zeros((kv_compression_dim,), jnp.float32),
        "k_up_w": w(keys[2], (kv_compression_dim, num_heads * head_dim), std),
        "k_up_b": jnp.zeros((num_heads * head_dim,), jnp.float32),
        "v_up_w": w(keys[3], (kv_compression_dim, num_heads * head_dim), std),
        "v_up_b": jnp.zeros((num_heads * head_dim,), jnp.float32),
    }
    std_out = initializer_range / math.sqrt(2 * num_layers)
    if init_method_mup:
        std_out /= math.sqrt(m_width)
    params["c_proj_w"] = w(keys[4], (num_heads * head_dim, hidden_size), std_out)
    params["c_proj_b"] = jnp.zeros((hidden_size,), jnp.float32)
    return params


def attention_forward(params, hidden_states, *, num_heads, head_dim,
                      attention_multiplier=None, mxu_dtype=jnp.bfloat16):
    """Latent attention forward (MHA, attention_mask=None path)."""
    B, S, hidden = hidden_states.shape
    HD = num_heads * head_dim
    x2d = hidden_states.reshape(B * S, hidden)

    scale = (
        1.0 / math.sqrt(head_dim)
        if attention_multiplier is None
        else attention_multiplier
    )

    # Fused projection 1: [q_proj (pre-scaled by softmax scale) | kv_down_proj]
    w1 = jnp.concatenate([params["q_proj_w"] * scale, params["kv_down_w"]],
                         axis=1)
    b1 = jnp.concatenate([params["q_proj_b"] * scale, params["kv_down_b"]])
    y1 = linear(x2d, w1, b1, out_dtype=mxu_dtype, mxu_dtype=mxu_dtype)
    q = y1[:, :HD]
    kv_latent = y1[:, HD:]

    # Fused projection 2: [k_up_proj | v_up_proj]
    w2 = jnp.concatenate([params["k_up_w"], params["v_up_w"]], axis=1)
    b2 = jnp.concatenate([params["k_up_b"], params["v_up_b"]])
    y2 = linear(kv_latent, w2, b2, out_dtype=mxu_dtype, mxu_dtype=mxu_dtype)
    k = y2[:, :HD]
    v = y2[:, HD:]

    # Heads stay packed on the lane axis; the attention BlockSpec indexes the
    # head group directly -> no (B,S,H,D)->(B,H,S,D) transposes.
    q = q.reshape(B, S, HD)
    k = k.reshape(B, S, HD)
    v = v.reshape(B, S, HD)

    ctx = attention_core(q, k, v, num_heads=num_heads, head_dim=head_dim)

    # ctx is already (B, S, H*D) in head-minor order == torch's
    # transpose(1,2).reshape(B, S, H*D); no transpose needed.
    out = linear(ctx.reshape(B * S, HD), params["c_proj_w"],
                 params["c_proj_b"], out_dtype=hidden_states.dtype,
                 mxu_dtype=mxu_dtype)
    return out.reshape(B, S, hidden)


# ---------------------------- Pure-JAX reference ---------------------------

def reference_forward(
    params, hidden_states, *, num_heads, head_dim, attention_multiplier=None
):
    B, S, hidden = hidden_states.shape
    x2d = hidden_states.reshape(B * S, hidden)
    hp = jax.lax.Precision.HIGHEST

    def lin(x, w, b):
        return jnp.dot(x, w, precision=hp) + b

    q = lin(x2d, params["q_proj_w"], params["q_proj_b"])
    kv = lin(x2d, params["kv_down_w"], params["kv_down_b"])
    k = lin(kv, params["k_up_w"], params["k_up_b"])
    v = lin(kv, params["v_up_w"], params["v_up_b"])

    def split_heads(t):
        return t.reshape(B, S, num_heads, head_dim).transpose(0, 2, 1, 3)

    q, k, v = split_heads(q), split_heads(k), split_heads(v)
    scale = (
        1.0 / math.sqrt(head_dim)
        if attention_multiplier is None
        else attention_multiplier
    )
    scores = jnp.einsum("bhqd,bhkd->bhqk", q, k, precision=hp) * scale
    probs = jax.nn.softmax(scores.astype(jnp.float32), axis=-1)
    ctx = jnp.einsum("bhqk,bhkd->bhqd", probs, v, precision=hp)
    ctx = ctx.transpose(0, 2, 1, 3).reshape(B * S, num_heads * head_dim)
    out = lin(ctx, params["c_proj_w"], params["c_proj_b"])
    return out.reshape(B, S, hidden)


# ---------------------------------- Main -----------------------------------

if __name__ == "__main__":
    # Module configuration (use_latent_attention=True, MHA, add_bias=True,
    # dropouts=0, attention_multiplier=None, attention_mask=None).
    B, S = 2, 8
    hidden_size = 32
    num_heads = 4
    kv_compression_dim = 16
    head_dim = 64  # head_dim_latent
    initializer_range = 0.02
    m_width = 1.0
    num_layers = 2

    key = jax.random.PRNGKey(0)
    k_params, k_x = jax.random.split(key)
    params = init_params(
        k_params,
        hidden_size=hidden_size,
        num_heads=num_heads,
        kv_compression_dim=kv_compression_dim,
        head_dim=head_dim,
        initializer_range=initializer_range,
        m_width=m_width,
        num_layers=num_layers,
        init_method_mup=False,
    )
    hidden_states = jax.random.normal(k_x, (B, S, hidden_size), dtype=jnp.float32)

    fwd = jax.jit(
        partial(attention_forward, num_heads=num_heads, head_dim=head_dim)
    )
    out = fwd(params, hidden_states)
    out = jax.block_until_ready(out)

    ref = reference_forward(
        params, hidden_states, num_heads=num_heads, head_dim=head_dim
    )
    assert out.shape == (B, S, hidden_size)
    err = float(jnp.max(jnp.abs(out.astype(jnp.float32) - ref)))
    assert err < 2e-3, f"mismatch vs pure-JAX reference: max abs err = {err}"

    print("KERNEL_OK")
</pallas_src>

<mosaic_0001>
module attributes {stable_mosaic.version = 11 : i64} {
  func.func @_linear_kernel(%arg0: i32, %arg1: i32, %arg2: i32, %arg3: memref<16x32xbf16, #tpu.memory_space<vmem>>, %arg4: memref<32x272xbf16, #tpu.memory_space<vmem>>, %arg5: memref<1x272xf32, #tpu.memory_space<vmem>>, %arg6: memref<16x272xbf16, #tpu.memory_space<vmem>>, %arg7: memref<16x272xf32, #tpu.memory_space<vmem>>) attributes {dimension_semantics = [#tpu.dimension_semantics<parallel>, #tpu.dimension_semantics<parallel>, #tpu.dimension_semantics<arbitrary>], iteration_bounds = array<i64: 1, 1, 1>, scalar_prefetch = 0 : i64, scratch_operands = 1 : i64, tpu.core_type = #tpu.core_type<tc>, window_params = [{transform_indices = @transform_0, window_bounds = array<i64: 16, 32>}, {transform_indices = @transform_1, window_bounds = array<i64: 32, 272>}, {transform_indices = @transform_2, window_bounds = array<i64: 1, 272>}, {transform_indices = @transform_3, window_bounds = array<i64: 16, 272>}]} {
    %c0_i32 = arith.constant 0 : i32
    %0 = arith.cmpi eq, %arg2, %c0_i32 : i32
    %1 = arith.extui %0 : i1 to i32
    %c0_i32_0 = arith.constant 0 : i32
    %2 = arith.cmpi ne, %1, %c0_i32_0 : i32
    scf.if %2 {
      %cst_10 = arith.constant 0.000000e+00 : f32
      %12 = vector.broadcast %cst_10 : f32 to vector<16x272xf32>
      %c0_11 = arith.constant 0 : index
      %c0_12 = arith.constant 0 : index
      %13 = vector.load %arg7[%c0_11, %c0_12] : memref<16x272xf32, #tpu.memory_space<vmem>>, vector<16x272xf32>
      tpu.vector_store %arg7[%c0_11, %c0_12], %12 {strides = array<i32>} : memref<16x272xf32, #tpu.memory_space<vmem>>, vector<16x272xf32>,
    } else {
    }
    %c0 = arith.constant 0 : index
    %c0_1 = arith.constant 0 : index
    %3 = vector.load %arg7[%c0, %c0_1] : memref<16x272xf32, #tpu.memory_space<vmem>>, vector<16x272xf32>
    %c0_2 = arith.constant 0 : index
    %c0_3 = arith.constant 0 : index
    %4 = vector.load %arg3[%c0_2, %c0_3] : memref<16x32xbf16, #tpu.memory_space<vmem>>, vector<16x32xbf16>
    %c0_4 = arith.constant 0 : index
    %c0_5 = arith.constant 0 : index
    %5 = vector.load %arg4[%c0_4, %c0_5] : memref<32x272xbf16, #tpu.memory_space<vmem>>, vector<32x272xbf16>
    %cst = arith.constant dense<0.000000e+00> : vector<16x272xf32>
    %6 = tpu.matmul %4, %5, %cst {dimension_numbers = #tpu.dot_dimension_numbers<[1], [0], [0], [1], [0, 0, 1, 1], [], []>} : vector<16x32xbf16>, vector<32x272xbf16>, vector<16x272xf32> -> vector<16x272xf32>
    %7 = arith.addf %3, %6 : vector<16x272xf32>
    %c0_6 = arith.constant 0 : index
    %c0_7 = arith.constant 0 : index
    %8 = vector.load %arg7[%c0_6, %c0_7] : memref<16x272xf32, #tpu.memory_space<vmem>>, vector<16x272xf32>
    tpu.vector_store %arg7[%c0_6, %c0_7], %7 {strides = array<i32>} : memref<16x272xf32, #tpu.memory_space<vmem>>, vector<16x272xf32>,
    %c0_i32_8 = arith.constant 0 : i32
    %9 = arith.cmpi eq, %arg2, %c0_i32_8 : i32
    %10 = arith.extui %9 : i1 to i32
    %c0_i32_9 = arith.constant 0 : i32
    %11 = arith.cmpi ne, %10, %c0_i32_9 : i32
    scf.if %11 {
      %c0_10 = arith.constant 0 : index
      %c0_11 = arith.constant 0 : index
      %12 = vector.load %arg7[%c0_10, %c0_11] : memref<16x272xf32, #tpu.memory_space<vmem>>, vector<16x272xf32>
      %c0_12 = arith.constant 0 : index
      %c0_13 = arith.constant 0 : index
      %13 = vector.load %arg5[%c0_12, %c0_13] : memref<1x272xf32, #tpu.memory_space<vmem>>, vector<1x272xf32>
      %14 = vector.broadcast %13 : vector<1x272xf32> to vector<16x272xf32>
      %15 = arith.addf %12, %14 : vector<16x272xf32>
      %16 = arith.truncf %15 : vector<16x272xf32> to vector<16x272xbf16>
      %c0_14 = arith.constant 0 : index
      %c0_15 = arith.constant 0 : index
      %17 = vector.load %arg6[%c0_14, %c0_15] : memref<16x272xbf16, #tpu.memory_space<vmem>>, vector<16x272xbf16>
      tpu.vector_store %arg6[%c0_14, %c0_15], %16 {strides = array<i32>} : memref<16x272xbf16, #tpu.memory_space<vmem>>, vector<16x272xbf16>,
    } else {
    }
    return
  }
  func.func @transform_0(%arg0: i32, %arg1: i32, %arg2: i32) -> (i32, i32) {
    %c0_i32 = arith.constant 0 : i32
    return %arg0, %arg2 : i32, i32
  }
  func.func @transform_1(%arg0: i32, %arg1: i32, %arg2: i32) -> (i32, i32) {
    %c0_i32 = arith.constant 0 : i32
    return %arg2, %arg1 : i32, i32
  }
  func.func @transform_2(%arg0: i32, %arg1: i32, %arg2: i32) -> (i32, i32) {
    %c0_i32 = arith.constant 0 : i32
    %c0_i32_0 = arith.constant 0 : i32
    return %c0_i32, %arg1 : i32, i32
  }
  func.func @transform_3(%arg0: i32, %arg1: i32, %arg2: i32) -> (i32, i32) {
    %c0_i32 = arith.constant 0 : i32
    return %arg0, %arg1 : i32, i32
  }
}

module attributes {stable_mosaic.version = 11 : i64} {
  func.func @_flash_attention_kernel(%arg0: i32, %arg1: i32, %arg2: i32, %arg3: i32, %arg4: memref<1x8x128xbf16, #tpu.memory_space<vmem>>, %arg5: memref<1x8x128xbf16, #tpu.memory_space<vmem>>, %arg6: memref<1x8x128xbf16, #tpu.memory_space<vmem>>, %arg7: memref<1x8x128xbf16, #tpu.memory_space<vmem>>, %arg8: memref<2x8x1xf32, #tpu.memory_space<vmem>>, %arg9: memref<2x8x1xf32, #tpu.memory_space<vmem>>, %arg10: memref<2x8x64xf32, #tpu.memory_space<vmem>>) attributes {dimension_semantics = [#tpu.dimension_semantics<parallel>, #tpu.dimension_semantics<parallel>, #tpu.dimension_semantics<parallel>, #tpu.dimension_semantics<arbitrary>], iteration_bounds = array<i64: 2, 2, 1, 1>, scalar_prefetch = 0 : i64, scratch_operands = 3 : i64, tpu.core_type = #tpu.core_type<tc>, window_params = [{transform_indices = @transform_0, window_bounds = array<i64: 1, 8, 128>}, {transform_indices = @transform_1, window_bounds = array<i64: 1, 8, 128>}, {transform_indices = @transform_2, window_bounds = array<i64: 1, 8, 128>}, {transform_indices = @transform_3, window_bounds = array<i64: 1, 8, 128>}]} {
    %c0_i32 = arith.constant 0 : i32
    %0 = arith.cmpi eq, %arg3, %c0_i32 : i32
    %1 = arith.extui %0 : i1 to i32
    %c0_i32_0 = arith.constant 0 : i32
    %2 = arith.cmpi ne, %1, %c0_i32_0 : i32
    scf.if %2 {
      %cst_53 = arith.constant 0xFF800000 : f32
      %84 = vector.broadcast %cst_53 : f32 to vector<2x8x1xf32>
      %c0_54 = arith.constant 0 : index
      %c0_55 = arith.constant 0 : index
      %c0_56 = arith.constant 0 : index
      %85 = vector.load %arg8[%c0_54, %c0_55, %c0_56] : memref<2x8x1xf32, #tpu.memory_space<vmem>>, vector<2x8x1xf32>
      tpu.vector_store %arg8[%c0_54, %c0_55, %c0_56], %84 {strides = array<i32>} : memref<2x8x1xf32, #tpu.memory_space<vmem>>, vector<2x8x1xf32>,
      %cst_57 = arith.constant 0.000000e+00 : f32
      %86 = vector.broadcast %cst_57 : f32 to vector<2x8x1xf32>
      %c0_58 = arith.constant 0 : index
      %c0_59 = arith.constant 0 : index
      %c0_60 = arith.constant 0 : index
      %87 = vector.load %arg9[%c0_58, %c0_59, %c0_60] : memref<2x8x1xf32, #tpu.memory_space<vmem>>, vector<2x8x1xf32>
      tpu.vector_store %arg9[%c0_58, %c0_59, %c0_60], %86 {strides = array<i32>} : memref<2x8x1xf32, #tpu.memory_space<vmem>>, vector<2x8x1xf32>,
      %cst_61 = arith.constant 0.000000e+00 : f32
      %88 = vector.broadcast %cst_61 : f32 to vector<2x8x64xf32>
      %c0_62 = arith.constant 0 : index
      %c0_63 = arith.constant 0 : index
      %c0_64 = arith.constant 0 : index
      %89 = vector.load %arg10[%c0_62, %c0_63, %c0_64] : memref<2x8x64xf32, #tpu.memory_space<vmem>>, vector<2x8x64xf32>
      tpu.vector_store %arg10[%c0_62, %c0_63, %c0_64], %88 {strides = array<i32>} : memref<2x8x64xf32, #tpu.memory_space<vmem>>, vector<2x8x64xf32>,
    } else {
    }
    %c0 = arith.constant 0 : index
    %c0_1 = arith.constant 0 : index
    %c0_2 = arith.constant 0 : index
    %3 = vector.load %arg4[%c0, %c0_1, %c0_2] : memref<1x8x128xbf16, #tpu.memory_space<vmem>>, vector<1x8x128xbf16>
    %4 = vector.shape_cast %3 : vector<1x8x128xbf16> to vector<8x128xbf16>
    %c0_3 = arith.constant 0 : index
    %c0_4 = arith.constant 0 : index
    %c0_5 = arith.constant 0 : index
    %5 = vector.load %arg5[%c0_3, %c0_4, %c0_5] : memref<1x8x128xbf16, #tpu.memory_space<vmem>>, vector<1x8x128xbf16>
    %6 = vector.shape_cast %5 : vector<1x8x128xbf16> to vector<8x128xbf16>
    %c0_6 = arith.constant 0 : index
    %c0_7 = arith.constant 0 : index
    %c0_8 = arith.constant 0 : index
    %7 = vector.load %arg6[%c0_6, %c0_7, %c0_8] : memref<1x8x128xbf16, #tpu.memory_space<vmem>>, vector<1x8x128xbf16>
    %8 = vector.shape_cast %7 : vector<1x8x128xbf16> to vector<8x128xbf16>
    %9 = vector.extract_strided_slice %4 {offsets = [0, 0], sizes = [8, 64], strides = [1, 1]} : vector<8x128xbf16> to vector<8x64xbf16>
    %10 = vector.extract_strided_slice %6 {offsets = [0, 0], sizes = [8, 64], strides = [1, 1]} : vector<8x128xbf16> to vector<8x64xbf16>
    %11 = vector.extract_strided_slice %8 {offsets = [0, 0], sizes = [8, 64], strides = [1, 1]} : vector<8x128xbf16> to vector<8x64xbf16>
    %cst = arith.constant dense<0.000000e+00> : vector<8x8xf32>
    %12 = tpu.matmul %9, %10, %cst {dimension_numbers = #tpu.dot_dimension_numbers<[1], [1], [0], [0], [0, 0, 1, 0], [], []>} : vector<8x64xbf16>, vector<8x64xbf16>, vector<8x8xf32> -> vector<8x8xf32>
    %c0_9 = arith.constant 0 : index
    %c0_10 = arith.constant 0 : index
    %c0_11 = arith.constant 0 : index
    %13 = vector.load %arg8[%c0_9, %c0_10, %c0_11] : memref<2x8x1xf32, #tpu.memory_space<vmem>>, vector<1x8x1xf32>
    %14 = vector.shape_cast %13 : vector<1x8x1xf32> to vector<8x1xf32>
    %cst_12 = arith.constant dense<0xFF800000> : vector<8xf32>
    %15 = vector.multi_reduction <maximumf>, %12, %cst_12 [1] : vector<8x8xf32> to vector<8xf32>
    %16 = vector.shape_cast %15 : vector<8xf32> to vector<8x1xf32>
    %17 = arith.maximumf %14, %16 : vector<8x1xf32>
    %18 = arith.subf %14, %17 : vector<8x1xf32>
    %19 = math.exp %18 : vector<8x1xf32>
    %20 = vector.broadcast %17 : vector<8x1xf32> to vector<8x8xf32>
    %21 = arith.subf %12, %20 : vector<8x8xf32>
    %22 = math.exp %21 : vector<8x8xf32>
    %c0_13 = arith.constant 0 : index
    %c0_14 = arith.constant 0 : index
    %c0_15 = arith.constant 0 : index
    %23 = vector.load %arg9[%c0_13, %c0_14, %c0_15] : memref<2x8x1xf32, #tpu.memory_space<vmem>>, vector<1x8x1xf32>
    %24 = vector.shape_cast %23 : vector<1x8x1xf32> to vector<8x1xf32>
    %25 = arith.mulf %19, %24 : vector<8x1xf32>
    %cst_16 = arith.constant dense<0.000000e+00> : vector<8xf32>
    %26 = vector.multi_reduction <add>, %22, %cst_16 [1] : vector<8x8xf32> to vector<8xf32>
    %27 = vector.shape_cast %26 : vector<8xf32> to vector<8x1xf32>
    %28 = arith.addf %25, %27 : vector<8x1xf32>
    %c0_17 = arith.constant 0 : index
    %c0_18 = arith.constant 0 : index
    %c0_19 = arith.constant 0 : index
    %29 = vector.load %arg9[%c0_17, %c0_18, %c0_19] : memref<2x8x1xf32, #tpu.memory_space<vmem>>, vector<1x8x1xf32>
    %30 = vector.shape_cast %29 : vector<1x8x1xf32> to vector<8x1xf32>
    %31 = vector.shape_cast %28 : vector<8x1xf32> to vector<1x8x1xf32>
    tpu.vector_store %arg9[%c0_17, %c0_18, %c0_19], %31 {strides = array<i32>} : memref<2x8x1xf32, #tpu.memory_space<vmem>>, vector<1x8x1xf32>,
    %c0_20 = arith.constant 0 : index
    %c0_21 = arith.constant 0 : index
    %c0_22 = arith.constant 0 : index
    %32 = vector.load %arg10[%c0_20, %c0_21, %c0_22] : memref<2x8x64xf32, #tpu.memory_space<vmem>>, vector<1x8x64xf32>
    %33 = vector.shape_cast %32 : vector<1x8x64xf32> to vector<8x64xf32>
    %34 = vector.broadcast %19 : vector<8x1xf32> to vector<8x64xf32>
    %35 = arith.mulf %34, %33 : vector<8x64xf32>
    %36 = arith.truncf %22 : vector<8x8xf32> to vector<8x8xbf16>
    %cst_23 = arith.constant dense<0.000000e+00> : vector<8x64xf32>
    %37 = tpu.matmul %36, %11, %cst_23 {dimension_numbers = #tpu.dot_dimension_numbers<[1], [0], [0], [1], [0, 0, 1, 1], [], []>} : vector<8x8xbf16>, vector<8x64xbf16>, vector<8x64xf32> -> vector<8x64xf32>
    %38 = arith.addf %35, %37 : vector<8x64xf32>
    %c0_24 = arith.constant 0 : index
    %c0_25 = arith.constant 0 : index
    %c0_26 = arith.constant 0 : index
    %39 = vector.load %arg10[%c0_24, %c0_25, %c0_26] : memref<2x8x64xf32, #tpu.memory_space<vmem>>, vector<1x8x64xf32>
    %40 = vector.shape_cast %39 : vector<1x8x64xf32> to vector<8x64xf32>
    %41 = vector.shape_cast %38 : vector<8x64xf32> to vector<1x8x64xf32>
    tpu.vector_store %arg10[%c0_24, %c0_25, %c0_26], %41 {strides = array<i32>} : memref<2x8x64xf32, #tpu.memory_space<vmem>>, vector<1x8x64xf32>,
    %c0_27 = arith.constant 0 : index
    %c0_28 = arith.constant 0 : index
    %c0_29 = arith.constant 0 : index
    %42 = vector.load %arg8[%c0_27, %c0_28, %c0_29] : memref<2x8x1xf32, #tpu.memory_space<vmem>>, vector<1x8x1xf32>
    %43 = vector.shape_cast %42 : vector<1x8x1xf32> to vector<8x1xf32>
    %44 = vector.shape_cast %17 : vector<8x1xf32> to vector<1x8x1xf32>
    tpu.vector_store %arg8[%c0_27, %c0_28, %c0_29], %44 {strides = array<i32>} : memref<2x8x1xf32, #tpu.memory_space<vmem>>, vector<1x8x1xf32>,
    %45 = vector.extract_strided_slice %4 {offsets = [0, 64], sizes = [8, 64], strides = [1, 1]} : vector<8x128xbf16> to vector<8x64xbf16>
    %46 = vector.extract_strided_slice %6 {offsets = [0, 64], sizes = [8, 64], strides = [1, 1]} : vector<8x128xbf16> to vector<8x64xbf16>
    %47 = vector.extract_strided_slice %8 {offsets = [0, 64], sizes = [8, 64], strides = [1, 1]} : vector<8x128xbf16> to vector<8x64xbf16>
    %cst_30 = arith.constant dense<0.000000e+00> : vector<8x8xf32>
    %48 = tpu.matmul %45, %46, %cst_30 {dimension_numbers = #tpu.dot_dimension_numbers<[1], [1], [0], [0], [0, 0, 1, 0], [], []>} : vector<8x64xbf16>, vector<8x64xbf16>, vector<8x8xf32> -> vector<8x8xf32>
    %c1 = arith.constant 1 : index
    %c0_31 = arith.constant 0 : index
    %c0_32 = arith.constant 0 : index
    %49 = vector.load %arg8[%c1, %c0_31, %c0_32] : memref<2x8x1xf32, #tpu.memory_space<vmem>>, vector<1x8x1xf32>
    %50 = vector.shape_cast %49 : vector<1x8x1xf32> to vector<8x1xf32>
    %cst_33 = arith.constant dense<0xFF800000> : vector<8xf32>
    %51 = vector.multi_reduction <maximumf>, %48, %cst_33 [1] : vector<8x8xf32> to vector<8xf32>
    %52 = vector.shape_cast %51 : vector<8xf32> to vector<8x1xf32>
    %53 = arith.maximumf %50, %52 : vector<8x1xf32>
    %54 = arith.subf %50, %53 : vector<8x1xf32>
    %55 = math.exp %54 : vector<8x1xf32>
    %56 = vector.broadcast %53 : vector<8x1xf32> to vector<8x8xf32>
    %57 = arith.subf %48, %56 : vector<8x8xf32>
    %58 = math.exp %57 : vector<8x8xf32>
    %c1_34 = arith.constant 1 : index
    %c0_35 = arith.constant 0 : index
    %c0_36 = arith.constant 0 : index
    %59 = vector.load %arg9[%c1_34, %c0_35, %c0_36] : memref<2x8x1xf32, #tpu.memory_space<vmem>>, vector<1x8x1xf32>
    %60 = vector.shape_cast %59 : vector<1x8x1xf32> to vector<8x1xf32>
    %61 = arith.mulf %55, %60 : vector<8x1xf32>
    %cst_37 = arith.constant dense<0.000000e+00> : vector<8xf32>
    %62 = vector.multi_reduction <add>, %58, %cst_37 [1] : vector<8x8xf32> to vector<8xf32>
    %63 = vector.shape_cast %62 : vector<8xf32> to vector<8x1xf32>
    %64 = arith.addf %61, %63 : vector<8x1xf32>
    %c1_38 = arith.constant 1 : index
    %c0_39 = arith.constant 0 : index
    %c0_40 = arith.constant 0 : index
    %65 = vector.load %arg9[%c1_38, %c0_39, %c0_40] : memref<2x8x1xf32, #tpu.memory_space<vmem>>, vector<1x8x1xf32>
    %66 = vector.shape_cast %65 : vector<1x8x1xf32> to vector<8x1xf32>
    %67 = vector.shape_cast %64 : vector<8x1xf32> to vector<1x8x1xf32>
    tpu.vector_store %arg9[%c1_38, %c0_39, %c0_40], %67 {strides = array<i32>} : memref<2x8x1xf32, #tpu.memory_space<vmem>>, vector<1x8x1xf32>,
    %c1_41 = arith.constant 1 : index
    %c0_42 = arith.constant 0 : index
    %c0_43 = arith.constant 0 : index
    %68 = vector.load %arg10[%c1_41, %c0_42, %c0_43] : memref<2x8x64xf32, #tpu.memory_space<vmem>>, vector<1x8x64xf32>
    %69 = vector.shape_cast %68 : vector<1x8x64xf32> to vector<8x64xf32>
    %70 = vector.broadcast %55 : vector<8x1xf32> to vector<8x64xf32>
    %71 = arith.mulf %70, %69 : vector<8x64xf32>
    %72 = arith.truncf %58 : vector<8x8xf32> to vector<8x8xbf16>
    %cst_44 = arith.constant dense<0.000000e+00> : vector<8x64xf32>
    %73 = tpu.matmul %72, %47, %cst_44 {dimension_numbers = #tpu.dot_dimension_numbers<[1], [0], [0], [1], [0, 0, 1, 1], [], []>} : vector<8x8xbf16>, vector<8x64xbf16>, vector<8x64xf32> -> vector<8x64xf32>
    %74 = arith.addf %71, %73 : vector<8x64xf32>
    %c1_45 = arith.constant 1 : index
    %c0_46 = arith.constant 0 : index
    %c0_47 = arith.constant 0 : index
    %75 = vector.load %arg10[%c1_45, %c0_46, %c0_47] : memref<2x8x64xf32, #tpu.memory_space<vmem>>, vector<1x8x64xf32>
    %76 = vector.shape_cast %75 : vector<1x8x64xf32> to vector<8x64xf32>
    %77 = vector.shape_cast %74 : vector<8x64xf32> to vector<1x8x64xf32>
    tpu.vector_store %arg10[%c1_45, %c0_46, %c0_47], %77 {strides = array<i32>} : memref<2x8x64xf32, #tpu.memory_space<vmem>>, vector<1x8x64xf32>,
    %c1_48 = arith.constant 1 : index
    %c0_49 = arith.constant 0 : index
    %c0_50 = arith.constant 0 : index
    %78 = vector.load %arg8[%c1_48, %c0_49, %c0_50] : memref<2x8x1xf32, #tpu.memory_space<vmem>>, vector<1x8x1xf32>
    %79 = vector.shape_cast %78 : vector<1x8x1xf32> to vector<8x1xf32>
    %80 = vector.shape_cast %53 : vector<8x1xf32> to vector<1x8x1xf32>
    tpu.vector_store %arg8[%c1_48, %c0_49, %c0_50], %80 {strides = array<i32>} : memref<2x8x1xf32, #tpu.memory_space<vmem>>, vector<1x8x1xf32>,
    %c0_i32_51 = arith.constant 0 : i32
    %81 = arith.cmpi eq, %arg3, %c0_i32_51 : i32
    %82 = arith.extui %81 : i1 to i32
    %c0_i32_52 = arith.constant 0 : i32
    %83 = arith.cmpi ne, %82, %c0_i32_52 : i32
    scf.if %83 {
      %c0_53 = arith.constant 0 : index
      %c0_54 = arith.constant 0 : index
      %c0_55 = arith.constant 0 : index
      %84 = vector.load %arg10[%c0_53, %c0_54, %c0_55] : memref<2x8x64xf32, #tpu.memory_space<vmem>>, vector<1x8x64xf32>
      %85 = vector.shape_cast %84 : vector<1x8x64xf32> to vector<8x64xf32>
      %c0_56 = arith.constant 0 : index
      %c0_57 = arith.constant 0 : index
      %c0_58 = arith.constant 0 : index
      %86 = vector.load %arg9[%c0_56, %c0_57, %c0_58] : memref<2x8x1xf32, #tpu.memory_space<vmem>>, vector<1x8x1xf32>
      %87 = vector.shape_cast %86 : vector<1x8x1xf32> to vector<8x1xf32>
      %88 = tpu.reciprocal %87 {approx = true} : vector<8x1xf32> -> vector<8x1xf32>
      %89 = vector.broadcast %88 : vector<8x1xf32> to vector<8x64xf32>
      %90 = arith.mulf %85, %89 : vector<8x64xf32>
      %c1_59 = arith.constant 1 : index
      %c0_60 = arith.constant 0 : index
      %c0_61 = arith.constant 0 : index
      %91 = vector.load %arg10[%c1_59, %c0_60, %c0_61] : memref<2x8x64xf32, #tpu.memory_space<vmem>>, vector<1x8x64xf32>
      %92 = vector.shape_cast %91 : vector<1x8x64xf32> to vector<8x64xf32>
      %c1_62 = arith.constant 1 : index
      %c0_63 = arith.constant 0 : index
      %c0_64 = arith.constant 0 : index
      %93 = vector.load %arg9[%c1_62, %c0_63, %c0_64] : memref<2x8x1xf32, #tpu.memory_space<vmem>>, vector<1x8x1xf32>
      %94 = vector.shape_cast %93 : vector<1x8x1xf32> to vector<8x1xf32>
      %95 = tpu.reciprocal %94 {approx = true} : vector<8x1xf32> -> vector<8x1xf32>
      %96 = vector.broadcast %95 : vector<8x1xf32> to vector<8x64xf32>
      %97 = arith.mulf %92, %96 : vector<8x64xf32>
      %98 = tpu.concatenate %90, %97 in 1 : vector<8x64xf32>, vector<8x64xf32> -> vector<8x128xf32>
      %99 = arith.truncf %98 : vector<8x128xf32> to vector<8x128xbf16>
      %c0_65 = arith.constant 0 : index
      %c0_66 = arith.constant 0 : index
      %c0_67 = arith.constant 0 : index
      %100 = vector.load %arg7[%c0_65, %c0_66, %c0_67] : memref<1x8x128xbf16, #tpu.memory_space<vmem>>, vector<1x8x128xbf16>
      %101 = vector.shape_cast %100 : vector<1x8x128xbf16> to vector<8x128xbf16>
      %102 = vector.shape_cast %99 : vector<8x128xbf16> to vector<1x8x128xbf16>
      tpu.vector_store %arg7[%c0_65, %c0_66, %c0_67], %102 {strides = array<i32>} : memref<1x8x128xbf16, #tpu.memory_space<vmem>>, vector<1x8x128xbf16>,
    } else {
    }
    return
  }
  func.func @transform_0(%arg0: i32, %arg1: i32, %arg2: i32, %arg3: i32) -> (i32, i32, i32) {
    %c0_i32 = arith.constant 0 : i32
    return %arg0, %arg2, %arg1 : i32, i32, i32
  }
  func.func @transform_1(%arg0: i32, %arg1: i32, %arg2: i32, %arg3: i32) -> (i32, i32, i32) {
    %c0_i32 = arith.constant 0 : i32
    return %arg0, %arg3, %arg1 : i32, i32, i32
  }
  func.func @transform_2(%arg0: i32, %arg1: i32, %arg2: i32, %arg3: i32) -> (i32, i32, i32) {
    %c0_i32 = arith.constant 0 : i32
    return %arg0, %arg3, %arg1 : i32, i32, i32
  }
  func.func @transform_3(%arg0: i32, %arg1: i32, %arg2: i32, %arg3: i32) -> (i32, i32, i32) {
    %c0_i32 = arith.constant 0 : i32
    return %arg0, %arg2, %arg1 : i32, i32, i32
  }
}

module attributes {stable_mosaic.version = 11 : i64} {
  func.func @_linear_kernel(%arg0: i32, %arg1: i32, %arg2: i32, %arg3: memref<16x16xbf16, #tpu.memory_space<vmem>>, %arg4: memref<16x512xbf16, #tpu.memory_space<vmem>>, %arg5: memref<1x512xf32, #tpu.memory_space<vmem>>, %arg6: memref<16x512xbf16, #tpu.memory_space<vmem>>, %arg7: memref<16x512xf32, #tpu.memory_space<vmem>>) attributes {dimension_semantics = [#tpu.dimension_semantics<parallel>, #tpu.dimension_semantics<parallel>, #tpu.dimension_semantics<arbitrary>], iteration_bounds = array<i64: 1, 1, 1>, scalar_prefetch = 0 : i64, scratch_operands = 1 : i64, tpu.core_type = #tpu.core_type<tc>, window_params = [{transform_indices = @transform_0, window_bounds = array<i64: 16, 16>}, {transform_indices = @transform_1, window_bounds = array<i64: 16, 512>}, {transform_indices = @transform_2, window_bounds = array<i64: 1, 512>}, {transform_indices = @transform_3, window_bounds = array<i64: 16, 512>}]} {
    %c0_i32 = arith.constant 0 : i32
    %0 = arith.cmpi eq, %arg2, %c0_i32 : i32
    %1 = arith.extui %0 : i1 to i32
    %c0_i32_0 = arith.constant 0 : i32
    %2 = arith.cmpi ne, %1, %c0_i32_0 : i32
    scf.if %2 {
      %cst_10 = arith.constant 0.000000e+00 : f32
      %12 = vector.broadcast %cst_10 : f32 to vector<16x512xf32>
      %c0_11 = arith.constant 0 : index
      %c0_12 = arith.constant 0 : index
      %13 = vector.load %arg7[%c0_11, %c0_12] : memref<16x512xf32, #tpu.memory_space<vmem>>, vector<16x512xf32>
      tpu.vector_store %arg7[%c0_11, %c0_12], %12 {strides = array<i32>} : memref<16x512xf32, #tpu.memory_space<vmem>>, vector<16x512xf32>,
    } else {
    }
    %c0 = arith.constant 0 : index
    %c0_1 = arith.constant 0 : index
    %3 = vector.load %arg7[%c0, %c0_1] : memref<16x512xf32, #tpu.memory_space<vmem>>, vector<16x512xf32>
    %c0_2 = arith.constant 0 : index
    %c0_3 = arith.constant 0 : index
    %4 = vector.load %arg3[%c0_2, %c0_3] : memref<16x16xbf16, #tpu.memory_space<vmem>>, vector<16x16xbf16>
    %c0_4 = arith.constant 0 : index
    %c0_5 = arith.constant 0 : index
    %5 = vector.load %arg4[%c0_4, %c0_5] : memref<16x512xbf16, #tpu.memory_space<vmem>>, vector<16x512xbf16>
    %cst = arith.constant dense<0.000000e+00> : vector<16x512xf32>
    %6 = tpu.matmul %4, %5, %cst {dimension_numbers = #tpu.dot_dimension_numbers<[1], [0], [0], [1], [0, 0, 1, 1], [], []>} : vector<16x16xbf16>, vector<16x512xbf16>, vector<16x512xf32> -> vector<16x512xf32>
    %7 = arith.addf %3, %6 : vector<16x512xf32>
    %c0_6 = arith.constant 0 : index
    %c0_7 = arith.constant 0 : index
    %8 = vector.load %arg7[%c0_6, %c0_7] : memref<16x512xf32, #tpu.memory_space<vmem>>, vector<16x512xf32>
    tpu.vector_store %arg7[%c0_6, %c0_7], %7 {strides = array<i32>} : memref<16x512xf32, #tpu.memory_space<vmem>>, vector<16x512xf32>,
    %c0_i32_8 = arith.constant 0 : i32
    %9 = arith.cmpi eq, %arg2, %c0_i32_8 : i32
    %10 = arith.extui %9 : i1 to i32
    %c0_i32_9 = arith.constant 0 : i32
    %11 = arith.cmpi ne, %10, %c0_i32_9 : i32
    scf.if %11 {
      %c0_10 = arith.constant 0 : index
      %c0_11 = arith.constant 0 : index
      %12 = vector.load %arg7[%c0_10, %c0_11] : memref<16x512xf32, #tpu.memory_space<vmem>>, vector<16x512xf32>
      %c0_12 = arith.constant 0 : index
      %c0_13 = arith.constant 0 : index
      %13 = vector.load %arg5[%c0_12, %c0_13] : memref<1x512xf32, #tpu.memory_space<vmem>>, vector<1x512xf32>
      %14 = vector.broadcast %13 : vector<1x512xf32> to vector<16x512xf32>
      %15 = arith.addf %12, %14 : vector<16x512xf32>
      %16 = arith.truncf %15 : vector<16x512xf32> to vector<16x512xbf16>
      %c0_14 = arith.constant 0 : index
      %c0_15 = arith.constant 0 : index
      %17 = vector.load %arg6[%c0_14, %c0_15] : memref<16x512xbf16, #tpu.memory_space<vmem>>, vector<16x512xbf16>
      tpu.vector_store %arg6[%c0_14, %c0_15], %16 {strides = array<i32>} : memref<16x512xbf16, #tpu.memory_space<vmem>>, vector<16x512xbf16>,
    } else {
    }
    return
  }
  func.func @transform_0(%arg0: i32, %arg1: i32, %arg2: i32) -> (i32, i32) {
    %c0_i32 = arith.constant 0 : i32
    return %arg0, %arg2 : i32, i32
  }
  func.func @transform_1(%arg0: i32, %arg1: i32, %arg2: i32) -> (i32, i32) {
    %c0_i32 = arith.constant 0 : i32
    return %arg2, %arg1 : i32, i32
  }
  func.func @transform_2(%arg0: i32, %arg1: i32, %arg2: i32) -> (i32, i32) {
    %c0_i32 = arith.constant 0 : i32
    %c0_i32_0 = arith.constant 0 : i32
    return %c0_i32, %arg1 : i32, i32
  }
  func.func @transform_3(%arg0: i32, %arg1: i32, %arg2: i32) -> (i32, i32) {
    %c0_i32 = arith.constant 0 : i32
    return %arg0, %arg1 : i32, i32
  }
}

module attributes {stable_mosaic.version = 11 : i64} {
  func.func @_linear_kernel(%arg0: i32, %arg1: i32, %arg2: i32, %arg3: memref<16x256xbf16, #tpu.memory_space<vmem>>, %arg4: memref<256x32xbf16, #tpu.memory_space<vmem>>, %arg5: memref<1x32xf32, #tpu.memory_space<vmem>>, %arg6: memref<16x32xf32, #tpu.memory_space<vmem>>, %arg7: memref<16x32xf32, #tpu.memory_space<vmem>>) attributes {dimension_semantics = [#tpu.dimension_semantics<parallel>, #tpu.dimension_semantics<parallel>, #tpu.dimension_semantics<arbitrary>], iteration_bounds = array<i64: 1, 1, 1>, scalar_prefetch = 0 : i64, scratch_operands = 1 : i64, tpu.core_type = #tpu.core_type<tc>, window_params = [{transform_indices = @transform_0, window_bounds = array<i64: 16, 256>}, {transform_indices = @transform_1, window_bounds = array<i64: 256, 32>}, {transform_indices = @transform_2, window_bounds = array<i64: 1, 32>}, {transform_indices = @transform_3, window_bounds = array<i64: 16, 32>}]} {
    %c0_i32 = arith.constant 0 : i32
    %0 = arith.cmpi eq, %arg2, %c0_i32 : i32
    %1 = arith.extui %0 : i1 to i32
    %c0_i32_0 = arith.constant 0 : i32
    %2 = arith.cmpi ne, %1, %c0_i32_0 : i32
    scf.if %2 {
      %cst_10 = arith.constant 0.000000e+00 : f32
      %12 = vector.broadcast %cst_10 : f32 to vector<16x32xf32>
      %c0_11 = arith.constant 0 : index
      %c0_12 = arith.constant 0 : index
      %13 = vector.load %arg7[%c0_11, %c0_12] : memref<16x32xf32, #tpu.memory_space<vmem>>, vector<16x32xf32>
      tpu.vector_store %arg7[%c0_11, %c0_12], %12 {strides = array<i32>} : memref<16x32xf32, #tpu.memory_space<vmem>>, vector<16x32xf32>,
    } else {
    }
    %c0 = arith.constant 0 : index
    %c0_1 = arith.constant 0 : index
    %3 = vector.load %arg7[%c0, %c0_1] : memref<16x32xf32, #tpu.memory_space<vmem>>, vector<16x32xf32>
    %c0_2 = arith.constant 0 : index
    %c0_3 = arith.constant 0 : index
    %4 = vector.load %arg3[%c0_2, %c0_3] : memref<16x256xbf16, #tpu.memory_space<vmem>>, vector<16x256xbf16>
    %c0_4 = arith.constant 0 : index
    %c0_5 = arith.constant 0 : index
    %5 = vector.load %arg4[%c0_4, %c0_5] : memref<256x32xbf16, #tpu.memory_space<vmem>>, vector<256x32xbf16>
    %cst = arith.constant dense<0.000000e+00> : vector<16x32xf32>
    %6 = tpu.matmul %4, %5, %cst {dimension_numbers = #tpu.dot_dimension_numbers<[1], [0], [0], [1], [0, 0, 1, 1], [], []>} : vector<16x256xbf16>, vector<256x32xbf16>, vector<16x32xf32> -> vector<16x32xf32>
    %7 = arith.addf %3, %6 : vector<16x32xf32>
    %c0_6 = arith.constant 0 : index
    %c0_7 = arith.constant 0 : index
    %8 = vector.load %arg7[%c0_6, %c0_7] : memref<16x32xf32, #tpu.memory_space<vmem>>, vector<16x32xf32>
    tpu.vector_store %arg7[%c0_6, %c0_7], %7 {strides = array<i32>} : memref<16x32xf32, #tpu.memory_space<vmem>>, vector<16x32xf32>,
    %c0_i32_8 = arith.constant 0 : i32
    %9 = arith.cmpi eq, %arg2, %c0_i32_8 : i32
    %10 = arith.extui %9 : i1 to i32
    %c0_i32_9 = arith.constant 0 : i32
    %11 = arith.cmpi ne, %10, %c0_i32_9 : i32
    scf.if %11 {
      %c0_10 = arith.constant 0 : index
      %c0_11 = arith.constant 0 : index
      %12 = vector.load %arg7[%c0_10, %c0_11] : memref<16x32xf32, #tpu.memory_space<vmem>>, vector<16x32xf32>
      %c0_12 = arith.constant 0 : index
      %c0_13 = arith.constant 0 : index
      %13 = vector.load %arg5[%c0_12, %c0_13] : memref<1x32xf32, #tpu.memory_space<vmem>>, vector<1x32xf32>
      %14 = vector.broadcast %13 : vector<1x32xf32> to vector<16x32xf32>
      %15 = arith.addf %12, %14 : vector<16x32xf32>
      %c0_14 = arith.constant 0 : index
      %c0_15 = arith.constant 0 : index
      %16 = vector.load %arg6[%c0_14, %c0_15] : memref<16x32xf32, #tpu.memory_space<vmem>>, vector<16x32xf32>
      tpu.vector_store %arg6[%c0_14, %c0_15], %15 {strides = array<i32>} : memref<16x32xf32, #tpu.memory_space<vmem>>, vector<16x32xf32>,
    } else {
    }
    return
  }
  func.func @transform_0(%arg0: i32, %arg1: i32, %arg2: i32) -> (i32, i32) {
    %c0_i32 = arith.constant 0 : i32
    return %arg0, %arg2 : i32, i32
  }
  func.func @transform_1(%arg0: i32, %arg1: i32, %arg2: i32) -> (i32, i32) {
    %c0_i32 = arith.constant 0 : i32
    return %arg2, %arg1 : i32, i32
  }
  func.func @transform_2(%arg0: i32, %arg1: i32, %arg2: i32) -> (i32, i32) {
    %c0_i32 = arith.constant 0 : i32
    %c0_i32_0 = arith.constant 0 : i32
    return %c0_i32, %arg1 : i32, i32
  }
  func.func @transform_3(%arg0: i32, %arg1: i32, %arg2: i32) -> (i32, i32) {
    %c0_i32 = arith.constant 0 : i32
    return %arg0, %arg1 : i32, i32
  }
}

</mosaic_0001>

<bundles_post_ra>
// kernel: attention_forward.7
= control target key start
LH: loop header
LB: loop body
LE: loop exit
PB: predicated region body
PF: predicated region fallthrough
CT: control target
= control target key end

     0   :  { %s430_s0 = inlined_call_operand.vmem [shape: bf16[16,256], index: 0, kind: input, shape index: {}]   ;;  %s431_s1 = inlined_call_operand.vmem [shape: bf16[256,32], index: 1, kind: input, shape index: {}]   ;;  %s432_s2 = inlined_call_operand.vmem [shape: f32[1,32], index: 2, kind: input, shape index: {}]   ;;  %s433_s3 = inlined_call_operand.hbm [shape: f32[16,32], index: 3, kind: output, shape index: {}]  }
   0x1   :  { %v288_v0 = vld [vmem:[%s431_s1 + $0x40] sm:$0xff]   ;;  %v290_v2 = vld [vmem:[%s431_s1 + $0x48] sm:$0xff]   ;;  %v292_v4 = vld [vmem:[%s431_s1 + $0x50] sm:$0xff]  }
   0x2   :  { %v289_v1 = vld [vmem:[%s431_s1] sm:$0xff]   ;;  %262 = vmatprep.subr.bf16.mxu0 %v288_v0  ;;  %v291_v3 = vld [vmem:[%s431_s1 + $0x8] sm:$0xff]   ;;  %v293_v5 = vld [vmem:[%s431_s1 + $0x10] sm:$0xff]  }
   0x3   :  { %263 = vmatpush3.bf16.msra.mxu0 %v289_v1  ;;  %v294_v6 = vld [vmem:[%s431_s1 + $0x58] sm:$0xff]   ;;  %v296_v8 = vld [vmem:[%s431_s1 + $0x60] sm:$0xff]   ;;  %v298_v10 = vld [vmem:[%s431_s1 + $0x68] sm:$0xff]  }
   0x4   :  { %264 = vmatprep.subr.bf16.mxu0 %v290_v2  ;;  %v295_v7 = vld [vmem:[%s431_s1 + $0x18] sm:$0xff]   ;;  %v297_v9 = vld [vmem:[%s431_s1 + $0x20] sm:$0xff]  }
   0x5   :  { %v306_v11 = vld [vmem:[%s430_s0 + $0x4] ss:$8 sps:$4 sm:$0xff]  }
   0x7   :  { %265 = vmatpush3.bf16.msra.mxu0 %v291_v3 }
   0x8   :  { %266 = vmatprep.subr.bf16.mxu0 %v292_v4 }
   0xb   :  { %267 = vmatpush3.bf16.msra.mxu0 %v293_v5 }
   0xc   :  { %268 = vmatprep.subr.bf16.mxu0 %v294_v6 }
   0xf   :  { %269 = vmatpush3.bf16.msra.mxu0 %v295_v7 }
  0x10   :  { %270 = vmatprep.subr.bf16.mxu0 %v296_v8 }
  0x11   :  { %8 = vsyncpa [#allocation4], 0  ;;  %v299_v12 = vld [vmem:[%s431_s1 + $0x28] sm:$0xff]   ;;  %197 = vmatprep.mubr.bf16.mxu0 %v306_v11  ;;  %v300_v13 = vld [vmem:[%s431_s1 + $0x70] sm:$0xff]   ;;  %vm20_vm0 = vcmask 261120   ;;  %v331_v18 = vmov 0.0  }
  0x12   :  { %v301_v14 = vld [vmem:[%s431_s1 + $0x30] sm:$0xff]   ;;  %v302_v15 = vld [vmem:[%s431_s1 + $0x78] sm:$0xff]   ;;  %v304_v17 = vld [vmem:[%s430_s0] ss:$8 sps:$4 sm:$0xff]   ;;  %21 = vst.msk [vmem:[#allocation2] sm:$0xff] %vm20_vm0, %v331_v18  ;;  %s332_s21 = smov [#allocation3]  }
  0x13   :  { %271 = vmatpush3.bf16.msra.mxu0 %v297_v9  ;;  %v303_v16 = vld [vmem:[%s431_s1 + $0x38] sm:$0xff]   ;;  %22 = vst.msk [vmem:[#allocation2 + $0x8] sm:$0xff] %vm20_vm0, %v331_v18  ;;  %v261_v29 = vld [vmem:[%s432_s2] ss:$0 sm:$0xff]  ;;  %s232_s22 = sshll.u32 %s332_s21, 4  ;;  %s233_s22 = int_to_ptr.vmem [resolvable:$true] %s232_s22 }
  0x14   :  { %272 = vmatprep.subr.bf16.mxu0 %v298_v10  ;;  %s307_s23 = scalar_lea.vmem %s233_s22, 256  ;;  %p312_p1 = scmp.lt.s32.totalorder %s233_s22, %s233_s22 }
  0x15   :  { %p308_p0 = scmp.ne.s32.totalorder %s233_s22, %s307_s23  ;;  %p313_p2 = scmp.lt.s32.totalorder %s307_s23, %s307_s23 }
  0x17   :  { %273 = vmatpush3.bf16.msra.mxu0 %v299_v12  ;;  %p314_p3 = por %p313_p2, %p312_p1 }
  0x18   :  { %274 = vmatprep.subr.bf16.mxu0 %v300_v13 }
  0x19   :  { %v23_v20 = vld [vmem:[#allocation2] sm:$0xff]  ;;  %p315_p4 = pnand %p314_p3, %p308_p0 }
  0x1a   :  { %v24_v24 = vld [vmem:[#allocation2 + $0x8] sm:$0xff] }
  0x1b   :  { %275 = vmatpush3.bf16.msra.mxu0 %v301_v14 }
  0x1c   :  { %276 = vmatprep.subr.bf16.mxu0 %v302_v15 }
  0x1f   :  { %277 = vmatpush3.bf16.msra.mxu0 %v303_v16 }
  0x22   :  { %198 = vmatmul.mubr.bf16.vlgmr.msra.gmra.mrb[0].mxu0 %v304_v17 }
  0xf5   :  { %v278_v19 = vpop.f32.mrb[0].mxu0 }
  0xf6   :  { %v279_v21 = vpop.f32.mrb[1].mxu0 }
  0xf7   :  { %v280_v22 = vadd.f32 %v279_v21, %v278_v19  ;;  %v281_v23 = vpop.f32.mrb[2].mxu0 }
  0xf8   :  { %v282_v25 = vpop.f32.mrb[3].mxu0 }
  0xf9   :  { %v206_v26 = vadd.f32 %v280_v22, %v23_v20  ;;  %v283_v27 = vadd.f32 %v282_v25, %v281_v23 }
  0xfb   :  { %209 = vst.msk [vmem:[#allocation2] sm:$0xff] %vm20_vm0, %v206_v26  ;;  %v207_v28 = vadd.f32 %v283_v27, %v24_v24 }
  0xfd   :  { %210 = vst.msk [vmem:[#allocation2 + $0x8] sm:$0xff] %vm20_vm0, %v207_v28 }
 0x102   :  { %v214_v30 = vld [vmem:[#allocation2] sm:$0xff] }
 0x103   :  { %v223_v31 = vadd.f32 %v261_v29, %v214_v30 }
 0x104   :  { %v215_v32 = vld [vmem:[#allocation2 + $0x8] sm:$0xff] }
 0x105   :  { %v224_v33 = vadd.f32 %v261_v29, %v215_v32  ;;  %225 = vst.msk [vmem:[#allocation3] sm:$0xff] %vm20_vm0, %v223_v31 }
 0x107   :  { %226 = vst.msk [vmem:[#allocation3 + $0x8] sm:$0xff] %vm20_vm0, %v224_v33 }
 0x108   :  { %318 = shalt.err (!%p315_p4)
}
 0x109   :  { %s319_s25 = scalar_lea.hbm %s433_s3, 256 }
 0x10a   :  { %p320_p5 = scmp.ne.s32.totalorder %s433_s3, %s319_s25  ;;  %p323_p6 = scmp.lt.u32.totalorder %s319_s25, %s433_s3 }
 0x10c   :  { %p325_p7 = pnand %p323_p6, %p320_p5 }
 0x10e   :  { %328 = shalt.err (!%p325_p7)
}
 0x10f   :  { %s333_s30 = smov 128   ;;  %s334_s4 = smov 8  }
 0x110   :  { %238 = dma.vmem_to_hbm [thread:$0]  %s233_s22, 256, %s433_s3, [#allocation4], %s333_s30, %s333_s30, %s334_s4  }
 0x111   :  { %329 = dma.done.wait [#allocation4], 256  }
 0x112   :  { %330 = vsyncadd [#allocation4], 4294967040 }
 0x113   :  { %242 = vsyncpa [#allocation4], 1 }

// kernel: attention_forward.4
= control target key start
LH: loop header
LB: loop body
LE: loop exit
PB: predicated region body
PF: predicated region fallthrough
CT: control target
= control target key end

     0   :  { %v281_v0 = vmov 0.0   ;;  %vm282_vm0 = vmmov 0   ;;  %vm21_vm1 = vcmask 130048   ;;  %v283_v3 = vmov 0   ;;  %s344_s1 = inlined_call_operand.vmem [shape: bf16[32,272], index: 1, kind: input, shape index: {}]   ;;  %s345_s0 = inlined_call_operand.vmem [shape: bf16[16,32], index: 0, kind: input, shape index: {}]   ;;  %s346_s2 = inlined_call_operand.vmem [shape: f32[1,272], index: 2, kind: input, shape index: {}]   ;;  %s347_s3 = inlined_call_operand.vmem [shape: bf16[16,272], index: 3, kind: output, shape index: {}]  }
   0x1   :  { %261 = vmatprep.subr.bf16.mxu1 %v281_v0  ;;  %v272_v1 = vld [vmem:[%s344_s1 + $0x4] ss:$12 sps:$4 sm:$0xff]   ;;  %265 = vmatprep.mubr.msk.bf16.mxu1 %vm282_vm0, %v281_v0  ;;  %v274_v2 = vld [vmem:[%s344_s1 + $0x8] ss:$12 sps:$4 sm:$0xff]   ;;  %22 = vst.msk [vmem:[#allocation2 + $0x10] sm:$0xff] %vm21_vm1, %v281_v0  ;;  %25 = vst.msk [vmem:[#allocation2 + $0x28] sm:$0xff] %vm21_vm1, %v281_v0  ;;  %v191_v9 = vlaneseq }
   0x2   :  { %115 = vmatprep.mubr.bf16.mxu0 %v283_v3  ;;  %83 = vmatprep.subr.bf16.mxu0 %v272_v1  ;;  %v275_v4 = vld [vmem:[%s344_s1] ss:$12 sps:$4 sm:$0xff]   ;;  %v276_v5 = vld [vmem:[%s344_s1 + $0x1c] ss:$12 sps:$4 sm:$0xff]   ;;  %v279_v7 = vld [vmem:[%s344_s1 + $0x18] ss:$12 sps:$4 sm:$0xff]  }
   0x3   :  { %262 = vmatpush3.bf16.msra.mxu1 %v274_v2  ;;  %84 = vmatpush1.bf16.msra.mxu0 %v275_v4  ;;  %v278_v6 = vld [vmem:[%s344_s1 + $0x20] ss:$12 sps:$4 sm:$0xff]   ;;  %vm79_vm2 = vcmask 261120   ;;  %v192_v10 = vshrl.u32 %v191_v9, 7  ;;  %vm233_vm3 = vcmask 125952  }
   0x4   :  { %263 = vmatprep.subr.bf16.mxu1 %v281_v0  ;;  %85 = vmatprep.subr.bf16.mxu0 %v276_v5  ;;  %v280_v8 = vld [vmem:[%s345_s0] sm:$0xff]  }
   0x5   :  { %v193_v11 = vsub.s32 0, %v192_v10  ;;  %v189_v12 = vld [vmem:[%s346_s2] sm:$0x7]  ;;  %v197_v13 = vsub.s32 1, %v192_v10  ;;  %v201_v24 = vsub.s32 2, %v192_v10 }
   0x7   :  { %264 = vmatpush3.bf16.msra.mxu1 %v278_v6  ;;  %86 = vmatpush1.bf16.msra.mxu0 %v279_v7  ;;  %v194_v16 = vrot.slane %v189_v12, %v193_v11  ;;  %v198_v21 = vrot.slane %v189_v12, %v197_v13  ;;  %v202_v32 = vrot.slane %v189_v12, %v201_v24 }
   0x8   :  { %v28_v14 = vld [vmem:[#allocation2 + $0x10] sm:$0xff]  ;;  %v31_v17 = vld [vmem:[#allocation2 + $0x28] sm:$0xff] }
   0xa   :  { %266 = vmatmul.mubr.msk.bf16.vlgmr.msra.gmra.mrb[0].mxu1 %vm79_vm2, %v280_v8  ;;  %248 = vmatmul.mubr.msk.bf16.vlgmr.msra.gmra.mrb[0].mxu0 %vm79_vm2, %v280_v8 }
  0xdd   :  { %v160_v15 = vpop.f32.mrb[0].mxu1  ;;  %v117_v19 = vpop.f32.mrb[0].mxu0 }
  0xde   :  { %v169_v18 = vadd.f32 %v160_v15, %v28_v14  ;;  %v267_v20 = vpop.f32.mrb[1].mxu1  ;;  %v119_v22 = vpop.f32.mrb[1].mxu0  ;;  %v206_v28 = vadd.f32 %v194_v16, %v117_v19 }
  0xdf   :  { %v163_v23 = vpop.f32.mrb[2].mxu1  ;;  %v121_v26 = vpop.f32.mrb[2].mxu0  ;;  %v207_v30 = vadd.f32 %v198_v21, %v119_v22 }
  0xe0   :  { %176 = vst.msk [vmem:[#allocation2 + $0x10] sm:$0xff] %vm21_vm1, %v169_v18  ;;  %v172_v25 = vadd.f32 %v163_v23, %v31_v17  ;;  %v268_v27 = vpop.f32.mrb[3].mxu1  ;;  %v123_v29 = vpop.f32.mrb[3].mxu0  ;;  %v209_v31 = vadd.f32 %v194_v16, %v121_v26 }
  0xe1   :  { %v254_v33 = vpack.c.bf16 %v207_v30, %v206_v28  ;;  %v210_v34 = vadd.f32 %v198_v21, %v123_v29 }
  0xe2   :  { %179 = vst.msk [vmem:[#allocation2 + $0x28] sm:$0xff] %vm21_vm1, %v172_v25 }
  0xe3   :  { %232 = vst [vmem:[%s347_s3] sm:$0xff] %v254_v33  ;;  %v256_v35 = vpack.c.bf16 %v210_v34, %v209_v31 }
  0xe5   :  { %235 = vst [vmem:[%s347_s3 + $0xc] sm:$0xff] %v256_v35 }
  0xe7   :  { %v185_v36 = vld [vmem:[#allocation2 + $0x10] sm:$0xff] }
  0xe8   :  { %v208_v37 = vadd.f32 %v202_v32, %v185_v36 }
  0xe9   :  { %v188_v38 = vld [vmem:[#allocation2 + $0x28] sm:$0xff] }
  0xea   :  { %v255_v39 = vpack.c.bf16 %v208_v37, %v208_v37  ;;  %v211_v40 = vadd.f32 %v202_v32, %v188_v38 }
  0xec   :  { %234 = vst.msk [vmem:[%s347_s3 + $0x8] sm:$0xf] %vm233_vm3, %v255_v39  ;;  %v257_v41 = vpack.c.bf16 %v211_v40, %v211_v40 }
  0xee   :  { %236 = vst.msk [vmem:[%s347_s3 + $0x14] sm:$0xf] %vm233_vm3, %v257_v41 }

// kernel: attention_forward.6
= control target key start
LH: loop header
LB: loop body
LE: loop exit
PB: predicated region body
PF: predicated region fallthrough
CT: control target
= control target key end

     0   :  { %s989_s12 = smov 0   ;;  %s991_s13 = smov 0   ;;  %s1097_s0 = inlined_call_operand.vmem [shape: bf16[2,8,256], index: 0, kind: input, shape index: {}]   ;;  %s1098_s1 = inlined_call_operand.vmem [shape: bf16[2,8,256], index: 1, kind: input, shape index: {}]   ;;  %s1099_s2 = inlined_call_operand.vmem [shape: bf16[2,8,256], index: 2, kind: input, shape index: {}]   ;;  %s1100_s3 = inlined_call_operand.vmem [shape: bf16[2,8,256], index: 3, kind: output, shape index: {}]  }
   0x1   :  { %s993_s14 = smov 0   ;;  %s995_s15 = smov 0  }
   0x2   :  { %s997_s16 = smov 0  }
   0x3 LB: > { %s35_s17 = sadd.s32 1, %s954_s14  ;;  %s39_s18 = sadd.s32 1, %s958_s15  ;;  %s962_s16 = sphi %s997_s16, %s13_s16   ;;  %s958_s15 = sphi %s995_s15, %s1104_s15   ;;  %s954_s14 = sphi %s993_s14, %s1103_s14   ;;  %s950_s13 = sphi %s991_s13, %s1102_s13   ;;  %s946_s12 = sphi %s989_s12, %s1101_s12  }
   0x4   : > { %p37_p0 = scmp.ge.s32.totalorder %s35_s17, 2  ;;  %p814_p1 = scmp.ge.s32.totalorder %s962_s16, 1 }
   0x5   : > { %p220_p2 = scmp.lt.s32.totalorder %s962_s16, 5 }
   0x6   : > { %s1106_s17 = smov (%p37_p0, %s35_s17), 0  ;;  %s1108_s18 = smov (!%p37_p0, %s39_s18), %s958_s15 }
   0x7   : > { %p221_p3 = pnand %p814_p1, %p220_p2  ;;  %p41_p4 = scmp.ge.s32.totalorder %s1108_s18, 2 }
   0x8   : > { %p282_p5 = scmp.lt.s32.totalorder (!%p221_p3), %s950_s13, 1  ;;  %p286_p6 = scmp.lt.s32.totalorder (!%p221_p3), %s946_s12, 1  ;;  %vm340_vm0 = vcmask (!%p221_p3), 523264   ;;  %v964_v0 = vmov (!%p221_p3), 0.0   ;;  %vm965_vm1 = vmmov (!%p221_p3), 0   ;;  %vm335_vm2 = vcmask (!%p221_p3), 7168  }
   0x9   : > { %s1110_s18 = smov (%p41_p4, %s1108_s18), 0  ;;  %224 = sbr.rel (%p221_p3) target bundleno = 1453 (0x5ad), region = 32 }
   0xa   : > { %840 = vmatprep.subr.bf16.mxu0 (!%p221_p3), %v964_v0  ;;  %341 = vst.msk [vmem:[#allocation4] sm:$0xff] (!%p221_p3), %vm340_vm0, %v964_v0  ;;  %342 = vst.msk [vmem:[#allocation4 + $0x8] sm:$0xff] (!%p221_p3), %vm340_vm0, %v964_v0  ;;  %842 = vmatprep.mubr.msk.bf16.mxu0 (!%p221_p3), %vm965_vm1, %v964_v0  ;;  %v966_v4 = vmov (!%p221_p3), -inf   ;;  %vm394_vm3 = vcmask (!%p221_p3), 64512   ;;  %v967_v10 = vmov (!%p221_p3), 0   ;;  %s968_s28 = smov (!%p221_p3), 64  }
   0xb   : > { %846 = vmatprep.subr.bf16.mxu1 (!%p221_p3), %v964_v0  ;;  %848 = vmatprep.mubr.msk.bf16.mxu1 (!%p221_p3), %vm965_vm1, %v964_v0  ;;  %336 = vst.msk [vmem:[#allocation2] sm:$0xff] (!%p221_p3), %vm335_vm2, %v966_v4  ;;  %337 = vst.msk [vmem:[#allocation2 + $0x8] sm:$0xff] (!%p221_p3), %vm335_vm2, %v966_v4  ;;  %vm429_vm4 = vcmask (!%p221_p3), 1043456  }
   0xc   : > { %338 = vst.msk [vmem:[#allocation3] sm:$0xff] (!%p221_p3), %vm335_vm2, %v964_v0  ;;  %339 = vst.msk [vmem:[#allocation3 + $0x8] sm:$0xff] (!%p221_p3), %vm335_vm2, %v964_v0  ;;  %909 = vset.pattern.permute.xlu0 (!%p221_p3), %v967_v10  ;;  %910 = vset.pattern.permute.xlu1 (!%p221_p3), %v967_v10 }
  0x10   : > { %s1112_s13 = smov (!%p282_p5, %s950_s13), 1  ;;  %s1114_s12 = smov (!%p286_p6, %s946_s12), 1 }
  0x11   : > { %s815_s19 = sshll.u32 %s1112_s13, 1 }
  0x12   : > { %s291_s20 = sadd.s32 %s815_s19, %s1114_s12  ;;  %v393_v13 = vld [vmem:[#allocation2] sm:$0xff]  ;;  %v533_v37 = vld [vmem:[#allocation2 + $0x8] sm:$0xff] }
  0x13   : > { %s1029_s21 = sshll.u32 %s291_s20, 2  ;;  %v410_v54 = vld [vmem:[#allocation3] sm:$0xff]  ;;  %v550_v60 = vld [vmem:[#allocation3 + $0x8] sm:$0xff] }
  0x14   : > { %s305_s24 = scalar_lea.vmem %s1098_s1, %s1029_s21  ;;  %s293_s27 = scalar_lea.vmem %s1097_s0, %s1029_s21 }
  0x15   : > { %v344_v1 = vld [vmem:[%s305_s24] sm:$0xf]  ;;  %s317_s4 = scalar_lea.vmem %s1099_s2, %s1029_s21  ;;  %s329_s7 = scalar_lea.vmem %s1100_s3, %s1029_s21 }
  0x16   : > { %v351_v2 = vsel %vm340_vm0, %v344_v1, 0  ;;  %v343_v3 = vld [vmem:[%s293_s27] sm:$0xf]  ;;  %v826_v11 = vcombine.low %v344_v1, %v344_v1 }
  0x17   : > { %841 = vmatpush3.bf16.xpose.msra.mxu0 %v351_v2  ;;  %v825_v12 = vcombine.low %v343_v3, %v343_v3  ;;  %v345_v17 = vld [vmem:[%s317_s4] sm:$0xf] }
  0x18   : > { %858 = vmatprep.subr.bf16.mxu0 %v964_v0  ;;  %484 = vrot.lane.b32.xlu1 %v826_v11, %s968_s28  ;;  %v431_v18 = vsel %vm429_vm4, %v345_v17, 0  ;;  %v828_v19 = vcombine.low %v345_v17, %v345_v17  ;;  %v418_v1 = vld [vmem:[#allocation4] sm:$0xff] }
  0x19   : > { %847 = vmatpush3.bf16.msra.mxu1 %v431_v18 }
  0x1a   : > { %852 = vmatprep.subr.bf16.mxu1 %v964_v0 }
  0x1c   : > { %479 = vrot.lane.b32.xlu1 %v825_v12, %s968_s28 }
  0x1e   : > { %843 = vmatmul.mubr.msk.bf16.vlgmr.msra.gmra.mrb[0].mxu0 %vm340_vm0, %v343_v3 }
  0x1f   : > { %860 = vmatprep.mubr.msk.bf16.mxu0 %vm965_vm1, %v964_v0 }
  0x8a   : > { %v485_v23 = vpop.permute.xlu1 %484 }
  0x8b   : > { %v490_v25 = vsel %vm340_vm0, %v485_v23, 0 }
  0x8e   : > { %v480_v27 = vpop.permute.xlu1 %479 }
  0xf1   : > { %v387_v5 = vpop.f32.mrb[0].mxu0 }
  0xf2   : > { %v844_v6 = vpop.f32.mrb[1].mxu0  ;;  %v395_v7 = vsel %vm394_vm3, %v387_v5, -inf }
  0xf3   : > { %396 = vmax.xlane.f32.xlu0 %v395_v7  ;;  %v390_v8 = vpop.f32.mrb[2].mxu0  ;;  %v558_v7 = vld [vmem:[#allocation4 + $0x8] sm:$0xff] }
  0xf4   : > { %v845_v9 = vpop.f32.mrb[3].mxu0 }
 0x180   : > { %v397_v14 = vpop.xlane.xlu0 %396 }
 0x181   : > { %v398_v15 = vmax.f32 %v393_v13, %v397_v14 }
 0x183   : > { %v399_v16 = vsub.f32 %v393_v13, %v398_v15  ;;  %475 = vst.msk [vmem:[#allocation2] sm:$0xff] %vm335_vm2, %v398_v15  ;;  %404 = vperm.xlu0 %909, %v398_v15  }
 0x185   : > { %v400_v51 = vmul.f32 1.442695, %v399_v16 }
 0x187   : > { %569 = vrot.lane.b32.xlu0 %v828_v19, %s968_s28 }
 0x202   : > { %v405_v20 = vpop.permute.xlu0 %404 }
 0x203   : > { %v407_v21 = vsub.f32 %v387_v5, %v405_v20 }
 0x205   : > { %v408_v22 = vmul.f32 1.442695, %v407_v21 }
 0x206   : > { %v570_v41 = vpop.permute.xlu0 %569 }
 0x207   : > { %912 = vpow2.f32 %v408_v22  ;;  %v575_v42 = vsel %vm429_vm4, %v570_v41, 0 }
 0x208   : > { %859 = vmatpush3.bf16.msra.mxu0 %v575_v42 }
 0x211   : > { %v913_v24 = vpop.eup %912 }
 0x212   : > { %v425_v26 = vpack.c.bf16 %v913_v24, %v913_v24  ;;  %v412_v43 = vsel %vm394_vm3, %v913_v24, 0.0 }
 0x214   : > { %849 = vmatmul.mubr.msk.bf16.vlgmr.msra.gmra.mrb[0].mxu1 %vm394_vm3, %v425_v26 }
 0x215   : > { %853 = vmatpush3.bf16.xpose.msra.mxu1 %v490_v25  ;;  %854 = vmatprep.mubr.msk.bf16.mxu1 %vm965_vm1, %v964_v0 }
 0x21c   : > { %855 = vmatmul.mubr.msk.bf16.vlgmr.msra.gmra.mrb[4].mxu1 %vm340_vm0, %v480_v27 }
 0x2e7   : > { %v467_v28 = vpop.f32.mrb[0].mxu1 }
 0x2e8   : > { %v850_v29 = vpop.f32.mrb[1].mxu1 }
 0x2e9   : > { %v470_v30 = vpop.f32.mrb[2].mxu1 }
 0x2ea   : > { %v851_v31 = vpop.f32.mrb[3].mxu1 }
 0x2ef   : > { %v526_v32 = vpop.f32.mrb[4].mxu1 }
 0x2f0   : > { %v856_v33 = vpop.f32.mrb[5].mxu1  ;;  %v534_v34 = vsel %vm394_vm3, %v526_v32, -inf }
 0x2f1   : > { %535 = vmax.xlane.f32.xlu1 %v534_v34  ;;  %v529_v35 = vpop.f32.mrb[6].mxu1 }
 0x2f2   : > { %v857_v36 = vpop.f32.mrb[7].mxu1 }
 0x37e   : > { %v536_v38 = vpop.xlane.xlu1 %535 }
 0x37f   : > { %v537_v39 = vmax.f32 %v533_v37, %v536_v38 }
 0x381   : > { %v538_v40 = vsub.f32 %v533_v37, %v537_v39  ;;  %619 = vst.msk [vmem:[#allocation2 + $0x8] sm:$0xff] %vm335_vm2, %v537_v39  ;;  %543 = vperm.xlu1 %910, %v537_v39  }
 0x383   : > { %v539_v50 = vmul.f32 1.442695, %v538_v40 }
 0x3a5   : > { %413 = vadd.xlane.f32.xlu1 %v412_v43 }
 0x400   : > { %v544_v44 = vpop.permute.xlu1 %543 }
 0x401   : > { %v546_v45 = vsub.f32 %v526_v32, %v544_v44 }
 0x403   : > { %v547_v46 = vmul.f32 1.442695, %v546_v45 }
 0x405   : > { %914 = vpow2.f32 %v547_v46 }
 0x406   : > { %916 = vpow2.f32 %v539_v50 }
 0x407   : > { %918 = vpow2.f32 %v400_v51 }
 0x40f   : > { %v915_v47 = vpop.eup %914 }
 0x410   : > { %v552_v48 = vsel %vm394_vm3, %v915_v47, 0.0  ;;  %v565_v49 = vpack.c.bf16 %v915_v47, %v915_v47  ;;  %v917_v52 = vpop.eup %916 }
 0x411   : > { %553 = vadd.xlane.f32.xlu0 %v552_v48  ;;  %v919_v53 = vpop.eup %918  ;;  %v551_v61 = vmul.f32 %v917_v52, %v550_v60 }
 0x412   : > { %861 = vmatmul.mubr.msk.bf16.vlgmr.msra.gmra.mrb[4].mxu0 %vm394_vm3, %v565_v49  ;;  %v411_v55 = vmul.f32 %v919_v53, %v410_v54 }
 0x427   : > { %561 = vperm.xlu0 %909, %v917_v52  }
 0x42b   : > { %421 = vperm.xlu0 %909, %v919_v53  }
 0x432   : > { %v414_v56 = vpop.xlane.xlu1 %413 }
 0x433   : > { %v415_v57 = vadd.f32 %v414_v56, %v411_v55 }
 0x435   : > { %417 = vst.msk [vmem:[#allocation3] sm:$0xff] %vm335_vm2, %v415_v57 }
 0x43c   : > { %v624_v58 = vld [vmem:[#allocation3] sm:$0xff] }
 0x43d   : > { %920 = vrcp.f32 %v624_v58 }
 0x447   : > { %v921_v59 = vpop.eup %920 }
 0x448   : > { %628 = vperm.xlu0 %909, %v921_v59  }
 0x49e   : > { %v554_v62 = vpop.xlane.xlu0 %553 }
 0x49f   : > { %v555_v63 = vadd.f32 %v554_v62, %v551_v61 }
 0x4a1   : > { %556 = vst.msk [vmem:[#allocation3 + $0x8] sm:$0xff] %vm335_vm2, %v555_v63 }
 0x4a6   : > { %v562_v0 = vpop.permute.xlu0 %561 }
 0x4a7   : > { %v564_v8 = vmul.f32 %v562_v0, %v558_v7 }
 0x4a8   : > { %v633_v2 = vld [vmem:[#allocation3 + $0x8] sm:$0xff] }
 0x4a9   : > { %922 = vrcp.f32 %v633_v2 }
 0x4aa   : > { %v422_v3 = vpop.permute.xlu0 %421 }
 0x4ab   : > { %v424_v4 = vmul.f32 %v422_v3, %v418_v1 }
 0x4ad   : > { %v473_v5 = vadd.f32 %v467_v28, %v424_v4 }
 0x4af   : > { %474 = vst.msk [vmem:[#allocation4] sm:$0xff] %vm340_vm0, %v473_v5 }
 0x4b3   : > { %v923_v6 = vpop.eup %922 }
 0x4b4   : > { %637 = vperm.xlu1 %910, %v923_v6  }
 0x4b6   : > { %v623_v18 = vld [vmem:[#allocation4] sm:$0xff] }
 0x4c7   : > { %v629_v17 = vpop.permute.xlu0 %628 }
 0x4c8   : > { %v631_v19 = vmul.f32 %v629_v17, %v623_v18 }
 0x4e5   : > { %v611_v9 = vpop.f32.mrb[4].mxu0 }
 0x4e6   : > { %v617_v10 = vadd.f32 %v611_v9, %v564_v8  ;;  %v862_v11 = vpop.f32.mrb[5].mxu0 }
 0x4e7   : > { %v614_v12 = vpop.f32.mrb[6].mxu0 }
 0x4e8   : > { %618 = vst.msk [vmem:[#allocation4 + $0x8] sm:$0xff] %vm340_vm0, %v617_v10  ;;  %v863_v13 = vpop.f32.mrb[7].mxu0 }
 0x4ef   : > { %v632_v15 = vld [vmem:[#allocation4 + $0x8] sm:$0xff] }
 0x533   : > { %v638_v14 = vpop.permute.xlu1 %637 }
 0x534   : > { %v640_v16 = vmul.f32 %v638_v14, %v632_v15 }
 0x536   : > { %642 = vrot.lane.b32.xlu0 %v640_v16, %s968_s28 }
 0x5a8   : > { %v643_v20 = vpop.permute.xlu0 %642 }
 0x5a9   : > { %v645_v21 = vsel %vm340_vm0, %v631_v19, %v643_v20 }
 0x5aa   : > { %v646_v22 = vpack.c.bf16 %v645_v21, %v645_v21 }
 0x5ac   : > { %647 = vst [vmem:[%s329_s7] sm:$0xf] %v646_v22 }
 0x5ad PF: > { %s13_s16 = sadd.s32 1, %s962_s16   ;;  %s1101_s12 = smov %s954_s14 }
 0x5ae   : > { %p10_p7 = scmp.ge.s32.totalorder %s13_s16, 6   ;;  %s1102_s13 = smov %s958_s15 }
 0x5af   : > { %s1103_s14 = smov %s1106_s17  ;;  %s1104_s15 = smov %s1110_s18 }
 0x5b0   :  { %12 = sbr.rel (!%p10_p7) target bundleno = 3 (0x3), region = 79 }

// kernel: attention_forward.5
= control target key start
LH: loop header
LB: loop body
LE: loop exit
PB: predicated region body
PF: predicated region fallthrough
CT: control target
= control target key end

     0   :  { %v268_v1 = vmov 0   ;;  %vm66_vm0 = vcmask 130048   ;;  %v185_v6 = vlaneseq  ;;  %s319_s1 = inlined_call_operand.vmem [shape: bf16[16,512], index: 1, kind: input, shape index: {}]   ;;  %s320_s0 = inlined_call_operand.vmem [shape: bf16[16,16], index: 0, kind: input, shape index: {}]   ;;  %s321_s2 = inlined_call_operand.vmem [shape: f32[1,512], index: 2, kind: input, shape index: {}]   ;;  %s322_s3 = inlined_call_operand.vmem [shape: bf16[16,512], index: 3, kind: output, shape index: {}]  }
   0x1   :  { %v261_v0 = vld [vmem:[%s319_s1 + $0x4] ss:$16 sps:$4 sm:$0xff]   ;;  %102 = vmatprep.mubr.bf16.mxu0 %v268_v1  ;;  %145 = vmatprep.mubr.bf16.mxu1 %v268_v1  ;;  %v263_v2 = vld [vmem:[%s319_s1 + $0xc] ss:$16 sps:$4 sm:$0xff]   ;;  %v265_v3 = vld [vmem:[%s319_s1] ss:$16 sps:$4 sm:$0xff]  }
   0x2   :  { %70 = vmatprep.subr.bf16.mxu0 %v261_v0  ;;  %v266_v4 = vld [vmem:[%s319_s1 + $0x8] ss:$16 sps:$4 sm:$0xff]   ;;  %113 = vmatprep.subr.bf16.mxu1 %v263_v2  ;;  %v267_v5 = vld [vmem:[%s320_s0] sm:$0xff]   ;;  %v186_v7 = vshrl.u32 %v185_v6, 7 }
   0x3   :  { %71 = vmatpush1.bf16.msra.mxu0 %v265_v3  ;;  %114 = vmatpush1.bf16.msra.mxu1 %v266_v4  ;;  %v183_v10 = vld [vmem:[%s321_s2] sm:$0xf] }
   0x4   :  { %v187_v8 = vsub.s32 0, %v186_v7  ;;  %v195_v9 = vsub.s32 2, %v186_v7  ;;  %v191_v11 = vsub.s32 1, %v186_v7  ;;  %v199_v12 = vsub.s32 3, %v186_v7 }
   0x6   :  { %250 = vmatmul.mubr.msk.bf16.vlgmr.msra.gmra.mrb[0].mxu0 %vm66_vm0, %v267_v5  ;;  %251 = vmatmul.mubr.msk.bf16.vlgmr.msra.gmra.mrb[0].mxu1 %vm66_vm0, %v267_v5  ;;  %v188_v13 = vrot.slane %v183_v10, %v187_v8  ;;  %v196_v14 = vrot.slane %v183_v10, %v195_v9  ;;  %v192_v15 = vrot.slane %v183_v10, %v191_v11 }
   0x7   :  { %v200_v16 = vrot.slane %v183_v10, %v199_v12 }
  0xd9   :  { %v104_v17 = vpop.f32.mrb[0].mxu0  ;;  %v147_v18 = vpop.f32.mrb[0].mxu1 }
  0xda   :  { %v205_v19 = vadd.f32 %v188_v13, %v104_v17  ;;  %v207_v20 = vadd.f32 %v196_v14, %v147_v18  ;;  %v106_v21 = vpop.f32.mrb[1].mxu0  ;;  %v149_v22 = vpop.f32.mrb[1].mxu1 }
  0xdb   :  { %v206_v23 = vadd.f32 %v192_v15, %v106_v21  ;;  %v208_v24 = vadd.f32 %v200_v16, %v149_v22  ;;  %v108_v25 = vpop.f32.mrb[2].mxu0  ;;  %v151_v26 = vpop.f32.mrb[2].mxu1 }
  0xdc   :  { %v209_v27 = vadd.f32 %v188_v13, %v108_v25  ;;  %v211_v28 = vadd.f32 %v196_v14, %v151_v26  ;;  %v110_v29 = vpop.f32.mrb[3].mxu0  ;;  %v153_v30 = vpop.f32.mrb[3].mxu1 }
  0xdd   :  { %v256_v31 = vpack.c.bf16 %v206_v23, %v205_v19  ;;  %v257_v32 = vpack.c.bf16 %v208_v24, %v207_v20  ;;  %v210_v33 = vadd.f32 %v192_v15, %v110_v29  ;;  %v212_v34 = vadd.f32 %v200_v16, %v153_v30 }
  0xdf   :  { %237 = vst [vmem:[%s322_s3] sm:$0xff] %v256_v31  ;;  %238 = vst [vmem:[%s322_s3 + $0x8] sm:$0xff] %v257_v32  ;;  %v258_v35 = vpack.c.bf16 %v210_v33, %v209_v27  ;;  %v259_v36 = vpack.c.bf16 %v212_v34, %v211_v28 }
  0xe1   :  { %239 = vst [vmem:[%s322_s3 + $0x10] sm:$0xff] %v258_v35  ;;  %240 = vst [vmem:[%s322_s3 + $0x18] sm:$0xff] %v259_v36 }

</bundles_post_ra>
